<compile_context>
chip_gen: v7x
topology: tpu7x:2x2x1
jax: 0.10.0
libtpu: 0.0.40
codegen_flags: <defaults>
</compile_context>

<pallas_src>
import functools

import jax
import jax.numpy as jnp
from jax.experimental import pallas as pl
from jax.experimental.pallas import tpu as pltpu


def _cond_embedder_kernel(x_ref, w_ref, b_ref, o_ref):
    # x_ref: (tb, K)   labels tile
    # w_ref: (K, N_p)  pre-transposed weight, lane-dense (N_p % 128 == 0)
    # b_ref: (1, N_p)  bias
    # o_ref: (tb, N_p) lane-dense output
    x = x_ref[...].astype(w_ref.dtype)
    acc = jnp.dot(x, w_ref[...], preferred_element_type=jnp.float32)
    o_ref[...] = (acc + b_ref[...].astype(jnp.float32)).astype(o_ref.dtype)


def prepare_cond_embedder_params(weight, bias):
    """One-time layout prep (parameter-init time, NOT per forward).

    Transposes the PyTorch (hidden, cond_dim) weight to (cond_dim, hidden) so the
    kernel's MXU RHS is canonical/lane-dense, and pads hidden up to a multiple of
    128 lanes so output stores are unmasked.
    """
    hidden, _ = weight.shape
    n_pad = (-hidden) % 128
    w_t = weight.T  # (cond_dim, hidden)
    if n_pad:
        w_t = jnp.pad(w_t, ((0, 0), (0, n_pad)))
        bias = jnp.pad(bias, ((0, n_pad),))
    return w_t, bias.reshape(1, hidden + n_pad), hidden


# Single resident block while labels + output stay under this many bytes.
# 8 MiB is safe under the 32 MiB default scoped VMEM on v5e/v6e/v7x (v7x has only
# 64 MiB physical, so we stay conservative rather than generation-sweeping).
_SINGLE_BLOCK_BYTES = 8 * 1024 * 1024


@functools.partial(
    jax.jit,
    static_argnames=("hidden_size", "batch_tile", "out_dtype", "single_block_bytes"))
def cond_embedder_forward(labels, weight_t, bias_p, hidden_size, *,
                          batch_tile=4096, out_dtype=None,
                          single_block_bytes=_SINGLE_BLOCK_BYTES):
    """labels: (B, cond_dim); weight_t/bias_p from prepare_cond_embedder_params."""
    B, K = labels.shape
    Kw, N_p = weight_t.shape
    assert Kw == K, f"cond_dim mismatch: labels K={K}, weight K={Kw}"
    out_dtype = labels.dtype if out_dtype is None else jnp.dtype(out_dtype)

    row_bytes = K * jnp.dtype(labels.dtype).itemsize + N_p * jnp.dtype(out_dtype).itemsize

    if B * row_bytes <= single_block_bytes:
        # Small / mid batch: single resident block, no grid, no per-step overhead.
        out = pl.pallas_call(
            _cond_embedder_kernel,
            out_shape=jax.ShapeDtypeStruct((B, N_p), out_dtype),
            in_specs=[
                pl.BlockSpec(memory_space=pltpu.MemorySpace.VMEM),
                pl.BlockSpec(memory_space=pltpu.MemorySpace.VMEM),
                pl.BlockSpec(memory_space=pltpu.MemorySpace.VMEM),
            ],
            out_specs=pl.BlockSpec(memory_space=pltpu.MemorySpace.VMEM),
        )(labels, weight_t, bias_p)
    else:
        # Large batch (token-level conditioning): tile the batch axis with big tiles,
        # keep weight/bias VMEM-resident across steps, let Pallas mask the ragged
        # last block (no wrapper pad/slice copies), shard across v7x TensorCores.
        tb = batch_tile
        assert tb % 8 == 0, "batch_tile must be a multiple of 8 (sublane alignment)"
        out = pl.pallas_call(
            _cond_embedder_kernel,
            out_shape=jax.ShapeDtypeStruct((B, N_p), out_dtype),
            grid=(pl.cdiv(B, tb),),
            in_specs=[
                pl.BlockSpec((tb, K), lambda i: (i, 0)),
                pl.BlockSpec((K, N_p), lambda i: (0, 0)),   # resident across steps
                pl.BlockSpec((1, N_p), lambda i: (0, 0)),   # resident across steps
            ],
            out_specs=pl.BlockSpec((tb, N_p), lambda i: (i, 0)),
            compiler_params=pltpu.CompilerParams(
                dimension_semantics=("parallel",)),
        )(labels, weight_t, bias_p)

    if N_p != hidden_size:
        out = out[:, :hidden_size]
    return out


def ref_forward(labels, weight, bias):
    # Pure-JAX reference of nn.Linear: y = x @ W.T + b
    return labels @ weight.T + bias


if __name__ == "__main__":
    key = jax.random.PRNGKey(0)
    k_lbl, k_lbl2, k_w, k_b = jax.random.split(key, 4)

    cond_dim = 32
    hidden_size = 128       # DiT-style hidden; multiple of 128 -> no padding needed
    dropout_prob = 0.1      # unused in forward (only sets an unused flag); kept for parity

    # PyTorch Linear layout: W is (out_features, in_features).
    weight = jax.random.normal(k_w, (hidden_size, cond_dim), dtype=jnp.float32) * 0.02
    bias = jax.random.normal(k_b, (hidden_size,), dtype=jnp.float32) * 0.01

    # One-time layout prep (parameter-init time, not per call).
    w_t, b_p, hidden = prepare_cond_embedder_params(weight, bias)

    # --- small batch: single resident block, no grid ---
    B = 8
    labels = jax.random.normal(k_lbl, (B, cond_dim), dtype=jnp.float32)
    out = jax.block_until_ready(cond_embedder_forward(labels, w_t, b_p, hidden))
    expected = ref_forward(labels, weight, bias)
    assert out.shape == (B, hidden_size)
    assert jnp.allclose(out, expected, atol=1e-4, rtol=1e-4)

    # --- mid-size batch: fits the VMEM budget -> still single-block (no grid) ---
    B2 = 600
    labels2 = jax.random.normal(k_lbl2, (B2, cond_dim), dtype=jnp.float32)
    out2 = jax.block_until_ready(cond_embedder_forward(labels2, w_t, b_p, hidden))
    expected2 = ref_forward(labels2, weight, bias)
    assert out2.shape == (B2, hidden_size)
    assert jnp.allclose(out2, expected2, atol=1e-4, rtol=1e-4)

    # --- forced gridded path: ragged last block handled by Pallas store masking ---
    out3 = jax.block_until_ready(
        cond_embedder_forward(labels2, w_t, b_p, hidden,
                              batch_tile=128, single_block_bytes=1))
    assert out3.shape == (B2, hidden_size)
    assert jnp.allclose(out3, expected2, atol=1e-4, rtol=1e-4)

    # --- bf16 output (f32 accumulation), halves store-side HBM traffic ---
    out4 = jax.block_until_ready(
        cond_embedder_forward(labels2, w_t, b_p, hidden, out_dtype=jnp.bfloat16))
    assert out4.dtype == jnp.bfloat16
    assert jnp.allclose(out4.astype(jnp.float32), expected2, atol=1e-2, rtol=2e-2)

    print("KERNEL_OK")
</pallas_src>

<mosaic_0001>
module attributes {stable_mosaic.version = 11 : i64} {
  func.func @_cond_embedder_kernel(%arg0: memref<8x32xf32, #tpu.memory_space<vmem>>, %arg1: memref<32x128xf32, #tpu.memory_space<vmem>>, %arg2: memref<1x128xf32, #tpu.memory_space<vmem>>, %arg3: memref<8x128xf32, #tpu.memory_space<vmem>>) attributes {dimension_semantics = [], scalar_prefetch = 0 : i64, scratch_operands = 0 : i64, tpu.core_type = #tpu.core_type<tc>} {
    %c0 = arith.constant 0 : index
    %c0_0 = arith.constant 0 : index
    %0 = vector.load %arg0[%c0, %c0_0] : memref<8x32xf32, #tpu.memory_space<vmem>>, vector<8x32xf32>
    %c0_1 = arith.constant 0 : index
    %c0_2 = arith.constant 0 : index
    %1 = vector.load %arg1[%c0_1, %c0_2] : memref<32x128xf32, #tpu.memory_space<vmem>>, vector<32x128xf32>
    %cst = arith.constant dense<0.000000e+00> : vector<8x128xf32>
    %2 = tpu.matmul %0, %1, %cst {dimension_numbers = #tpu.dot_dimension_numbers<[1], [0], [0], [1], [0, 0, 1, 1], [], []>} : vector<8x32xf32>, vector<32x128xf32>, vector<8x128xf32> -> vector<8x128xf32>
    %c0_3 = arith.constant 0 : index
    %c0_4 = arith.constant 0 : index
    %3 = vector.load %arg2[%c0_3, %c0_4] : memref<1x128xf32, #tpu.memory_space<vmem>>, vector<1x128xf32>
    %4 = vector.broadcast %3 : vector<1x128xf32> to vector<8x128xf32>
    %5 = arith.addf %2, %4 : vector<8x128xf32>
    %c0_5 = arith.constant 0 : index
    %c0_6 = arith.constant 0 : index
    %6 = vector.load %arg3[%c0_5, %c0_6] : memref<8x128xf32, #tpu.memory_space<vmem>>, vector<8x128xf32>
    tpu.vector_store %arg3[%c0_5, %c0_6], %5 {strides = array<i32>} : memref<8x128xf32, #tpu.memory_space<vmem>>, vector<8x128xf32>,
    return
  }
}

</mosaic_0001>

<bundles_post_ra>
// kernel: cond_embedder_forward.1
= control target key start
LH: loop header
LB: loop body
LE: loop exit
PB: predicated region body
PF: predicated region fallthrough
CT: control target
= control target key end

     0   :  { %8 = vsyncpa [#allocation3], 0  ;;  %s322_s0 = inlined_call_operand.hbm [shape: f32[8,32], index: 0, kind: input, shape index: {}]   ;;  %s323_s1 = inlined_call_operand.hbm [shape: f32[32,128], index: 1, kind: input, shape index: {}]   ;;  %s324_s2 = inlined_call_operand.vmem [shape: f32[1,128], index: 2, kind: input, shape index: {}]   ;;  %s325_s3 = inlined_call_operand.hbm [shape: f32[8,128], index: 3, kind: output, shape index: {}]  }
   0x1   :  { %9 = vsyncpa [#allocation6], 0 }
   0x2   :  { %10 = vsyncpa [#allocation4], 0  ;;  %s248_s12 = smov [#allocation2]   ;;  %s249_s14 = smov [#allocation5]  }
   0x3   :  { %s17_s13 = sshll.u32 %s248_s12, 4  ;;  %s26_s15 = sshll.u32 %s249_s14, 4  ;;  %s18_s13 = int_to_ptr.vmem [resolvable:$true] %s17_s13  ;;  %s276_s15 = int_to_ptr.vmem [resolvable:$true] %s26_s15 }
   0x4   :  { %s176_s18 = scalar_lea.hbm %s322_s0, 128 }
   0x5   :  { %p177_p0 = scmp.ne.s32.totalorder %s322_s0, %s176_s18  ;;  %p180_p1 = scmp.lt.u32.totalorder %s176_s18, %s322_s0 }
   0x7   :  { %p182_p2 = pnand %p180_p1, %p177_p0 }
   0x9   :  { %185 = shalt.err (!%p182_p2)
}
   0xa   :  { %s186_s23 = scalar_lea.vmem %s18_s13, 128  ;;  %p191_p4 = scmp.lt.s32.totalorder %s18_s13, %s18_s13 }
   0xb   :  { %p187_p3 = scmp.ne.s32.totalorder %s18_s13, %s186_s23  ;;  %p192_p5 = scmp.lt.s32.totalorder %s186_s23, %s186_s23 }
   0xd   :  { %p193_p6 = por %p192_p5, %p191_p4 }
   0xf   :  { %p194_p7 = pnand %p193_p6, %p187_p3 }
  0x11   :  { %197 = shalt.err (!%p194_p7)
}
  0x12   :  { %20 = dma.hbm_to_vmem [thread:$0]  %s322_s0, 128, %s18_s13, [#allocation3]  }
  0x13   :  { %s198_s28 = scalar_lea.hbm %s323_s1, 512 }
  0x14   :  { %p199_p8 = scmp.ne.s32.totalorder %s323_s1, %s198_s28  ;;  %p202_p9 = scmp.lt.u32.totalorder %s198_s28, %s323_s1 }
  0x16   :  { %p204_p10 = pnand %p202_p9, %p199_p8 }
  0x18   :  { %207 = shalt.err (!%p204_p10)
}
  0x19   :  { %s208_s6 = scalar_lea.vmem %s276_s15, 512  ;;  %p213_p12 = scmp.lt.s32.totalorder %s276_s15, %s276_s15 }
  0x1a   :  { %p209_p11 = scmp.ne.s32.totalorder %s276_s15, %s208_s6  ;;  %p214_p13 = scmp.lt.s32.totalorder %s208_s6, %s208_s6 }
  0x1c   :  { %p215_p0 = por %p214_p13, %p213_p12 }
  0x1e   :  { %p216_p1 = pnand %p215_p0, %p209_p11 }
  0x20   :  { %219 = shalt.err (!%p216_p1)
}
  0x21   :  { %s250_s0 = smov 128   ;;  %s251_s7 = smov 8  }
  0x22   :  { %32 = dma.hbm_to_vmem [thread:$0]  %s323_s1, 512, %s276_s15, [#allocation6], %s250_s0, %s250_s0, %s251_s7  }
  0x23   :  { %242 = dma.done.wait [#allocation3], 128  }
  0x24   :  { %243 = vsyncadd [#allocation3], 4294967168 }
  0x25   :  { %244 = dma.done.wait [#allocation6], 512  }
  0x26   :  { %245 = vsyncadd [#allocation6], 4294966784  ;;  %v252_v0 = vmov 0.0|0.0   ;;  %vm253_vm0 = vmmov 0   ;;  %v254_v1 = vmov 0.0   ;;  %v42_v2 = vld [vmem:[#allocation5] sm:$0xff] }
  0x27   :  { %162 = vmatprep.subr.bf16.mxu0 %v252_v0  ;;  %159 = vmatprep.mubr.msk.f32.mxu0 %vm253_vm0, %v254_v1  ;;  %v43_v3 = vld [vmem:[#allocation5 + $0x8] sm:$0xff]  ;;  %v44_v4 = vld [vmem:[#allocation5 + $0x10] sm:$0xff]  ;;  %v45_v6 = vld [vmem:[#allocation5 + $0x18] sm:$0xff]  ;;  %vm53_vm1 = vcmask 261120   ;;  %s255_s11 = smov [#allocation7]  }
  0x28   :  { %v163_v5 = vpack.c.bf16 %v43_v3, %v42_v2  ;;  %v166_v7 = vpack.c.bf16 %v45_v6, %v44_v4  ;;  %v41_v8 = vld [vmem:[#allocation2] sm:$0xff]  ;;  %s134_s12 = sshll.u32 %s255_s11, 4  ;;  %s135_s12 = int_to_ptr.vmem [resolvable:$true] %s134_s12 }
  0x29   :  { %v144_v9 = vld [vmem:[%s324_s2] ss:$0 sm:$0xff]  ;;  %s220_s13 = scalar_lea.vmem %s135_s12, 128  ;;  %p225_p3 = scmp.lt.s32.totalorder %s135_s12, %s135_s12 }
  0x2a   :  { %164 = vmatpush3.bf16.msra.mxu0 %v163_v5  ;;  %p221_p2 = scmp.ne.s32.totalorder %s135_s12, %s220_s13  ;;  %p226_p4 = scmp.lt.s32.totalorder %s220_s13, %s220_s13 }
  0x2b   :  { %165 = vmatprep.subr.bf16.mxu0 %v252_v0 }
  0x2c   :  { %p227_p5 = por %p226_p4, %p225_p3 }
  0x2e   :  { %167 = vmatpush3.bf16.msra.mxu0 %v166_v7  ;;  %p228_p6 = pnand %p227_p5, %p221_p2 }
  0x31   :  { %160 = vmatmul.mubr.msk.f32.vlgmr.msra.gmra.mrb[0].mxu0 %vm53_vm1, %v41_v8 }
 0x104   :  { %v123_v10 = vpop.f32.mrb[0].mxu0 }
 0x105   :  { %v124_v11 = vadd.f32 %v144_v9, %v123_v10  ;;  %v161_v12 = vpop.f32.mrb[1].mxu0 }
 0x107   :  { %127 = vst [vmem:[#allocation7] sm:$0xff] %v124_v11 }
 0x108   :  { %231 = shalt.err (!%p228_p6)
}
 0x109   :  { %s232_s16 = scalar_lea.hbm %s325_s3, 128 }
 0x10a   :  { %p233_p7 = scmp.ne.s32.totalorder %s325_s3, %s232_s16  ;;  %p236_p8 = scmp.lt.u32.totalorder %s232_s16, %s325_s3 }
 0x10c   :  { %p238_p9 = pnand %p236_p8, %p233_p7 }
 0x10e   :  { %241 = shalt.err (!%p238_p9)
}
 0x10f   :  { %137 = dma.vmem_to_hbm [thread:$0]  %s135_s12, 128, %s325_s3, [#allocation4]  }
 0x110   :  { %246 = dma.done.wait [#allocation4], 128  }
 0x111   :  { %247 = vsyncadd [#allocation4], 4294967168 }
 0x112   :  { %141 = vsyncpa [#allocation3], 1 }
 0x113   :  { %142 = vsyncpa [#allocation6], 1 }
 0x114   :  { %143 = vsyncpa [#allocation4], 1 }

</bundles_post_ra>
